<compile_context>
chip_gen: v6e
topology: v6e:2x2x1
jax: 0.10.0
libtpu: 0.0.40
codegen_flags: <defaults>
</compile_context>

<pallas_src>
import jax
import jax.numpy as jnp
from jax.experimental import pallas as pl
from jax.experimental.pallas import tpu as pltpu


LANES = 128


def _round_up(x, m):
    return (x + m - 1) // m * m


def _model_kernel(patches_ref, pool_ref, w_emb_ref, b_emb_ref,
                  w_head_ref, b_head_ref, out_ref):
    # patches_ref: (Bt*NP, K)   bf16  -- Bt images' patches, row-major per image
    # pool_ref:    (Bt, Bt*NP)  f32   -- block-diagonal ones (per-image patch sum)
    # w_emb_ref:   (K, Dp)      bf16  -- Conv2d weight flattened, zero-padded to Dp
    # b_emb_ref:   (1, Dp)      f32
    # w_head_ref:  (Dp, NCp)    bf16  -- head weight pre-scaled by 1/NP (mean fold)
    # b_head_ref:  (1, NCp)     f32
    # out_ref:     (Bt, NCp)    f32
    emb = jnp.dot(patches_ref[...], w_emb_ref[...],
                  preferred_element_type=jnp.float32)            # (Bt*NP, Dp)  MXU
    emb = jnp.maximum(emb + b_emb_ref[...], 0.0)                 # bias + ReLU, f32 VPU
    pooled = jnp.dot(pool_ref[...], emb,
                     preferred_element_type=jnp.float32)         # (Bt, Dp)  per-image sum
    logits = jnp.dot(pooled.astype(w_head_ref.dtype), w_head_ref[...],
                     preferred_element_type=jnp.float32)         # (Bt, NCp) MXU
    out_ref[...] = logits + b_head_ref[...]


def model_forward(images, w_emb, b_emb, w_head, b_head, patch, block_batch=8):
    """images: (B, C, H, W) float32 (NCHW, PyTorch convention)."""
    B, C, H, W = images.shape
    K, D = w_emb.shape
    NC = w_head.shape[1]
    gh, gw = H // patch, W // patch
    NP = gh * gw
    Bt = block_batch
    assert B % Bt == 0, "batch must be divisible by block_batch"
    M = Bt * NP  # rows of the patch-embed matmul per grid step (128 here)

    # im2col for a stride==kernel conv (patch embedding): plain-JAX glue.
    # TODO(synk): at real model scale, fuse this rearrangement into the kernel
    #             via an index_map on the raw NCHW input instead of
    #             materializing a second copy of the input in HBM.
    patches = images.reshape(B, C, gh, patch, gw, patch)
    patches = patches.transpose(0, 2, 4, 1, 3, 5).reshape(B * NP, K)
    patches = patches.astype(jnp.bfloat16)

    Dp = _round_up(D, LANES)
    NCp = _round_up(NC, LANES)

    # Zero-pad feature / class dims to 128 lanes (pure layout plumbing).
    w_emb_p = jnp.zeros((K, Dp), jnp.bfloat16).at[:, :D].set(
        w_emb.astype(jnp.bfloat16))
    b_emb_p = jnp.zeros((1, Dp), jnp.float32).at[:, :D].set(
        b_emb.reshape(1, D).astype(jnp.float32))
    # Fold the 1/NP of the mean-pool into the head weight.
    w_head_p = jnp.zeros((Dp, NCp), jnp.bfloat16).at[:D, :NC].set(
        (w_head / NP).astype(jnp.bfloat16))
    b_head_p = jnp.zeros((1, NCp), jnp.float32).at[:, :NC].set(
        b_head.reshape(1, NC).astype(jnp.float32))

    # Block-diagonal pooling matrix: pool[i, j] = 1 iff patch j belongs to image i.
    pool = (jnp.arange(M)[None, :] // NP == jnp.arange(Bt)[:, None]
            ).astype(jnp.float32)

    out = pl.pallas_call(
        _model_kernel,
        out_shape=jax.ShapeDtypeStruct((B, NCp), jnp.float32),
        grid_spec=pltpu.PrefetchScalarGridSpec(
            num_scalar_prefetch=0,
            grid=(B // Bt,),
            in_specs=[
                pl.BlockSpec((M, K), lambda g: (g, 0)),        # streamed patches
                pl.BlockSpec((Bt, M), lambda g: (0, 0)),       # resident pool matrix
                pl.BlockSpec((K, Dp), lambda g: (0, 0)),       # resident weights
                pl.BlockSpec((1, Dp), lambda g: (0, 0)),
                pl.BlockSpec((Dp, NCp), lambda g: (0, 0)),
                pl.BlockSpec((1, NCp), lambda g: (0, 0)),
            ],
            out_specs=pl.BlockSpec((Bt, NCp), lambda g: (g, 0)),
        ),
        compiler_params=pltpu.CompilerParams(
            dimension_semantics=("parallel",)),
    )(patches, pool, w_emb_p, b_emb_p, w_head_p, b_head_p)
    return out[:, :NC]


def model_forward_ref(images, w_emb, b_emb, w_head, b_head, patch):
    """Pure-JAX f32 reference (same math) for a correctness check."""
    B, C, H, W = images.shape
    gh, gw = H // patch, W // patch
    p = images.reshape(B, C, gh, patch, gw, patch)
    p = p.transpose(0, 2, 4, 1, 3, 5).reshape(B, gh * gw, -1)
    emb = jnp.maximum(p @ w_emb + b_emb.reshape(1, 1, -1), 0.0)
    pooled = emb.mean(axis=1)
    return pooled @ w_head + b_head.reshape(1, -1)


if __name__ == "__main__":
    # Small shapes: batch=16 (8 images per grid step -> 2 grid steps),
    # channels=4, spatial=16x16, patch=4, hidden=32, classes=10.
    B, C, H, W = 16, 4, 16, 16
    PATCH = 4
    D = 32
    NUM_CLASSES = 10
    K = C * PATCH * PATCH

    key = jax.random.PRNGKey(0)
    k_img, k_we, k_be, k_wh, k_bh = jax.random.split(key, 5)

    images = jax.random.normal(k_img, (B, C, H, W), dtype=jnp.float32)
    # Conv2d weight (D, C, P, P) flattened over (C, kh, kw) -> (K, D) for matmul.
    w_emb = 0.05 * jax.random.normal(k_we, (K, D), dtype=jnp.float32)
    b_emb = 0.05 * jax.random.normal(k_be, (1, D), dtype=jnp.float32)
    w_head = 0.05 * jax.random.normal(k_wh, (D, NUM_CLASSES), dtype=jnp.float32)
    b_head = 0.05 * jax.random.normal(k_bh, (1, NUM_CLASSES), dtype=jnp.float32)

    out = model_forward(images, w_emb, b_emb, w_head, b_head, PATCH, block_batch=8)
    out = jax.block_until_ready(out)

    ref = model_forward_ref(images, w_emb, b_emb, w_head, b_head, PATCH)
    assert out.shape == (B, NUM_CLASSES)
    # bf16 MXU operands (f32 accumulation) -> relaxed tolerance vs f32 reference.
    assert jnp.allclose(out, ref, atol=1e-2, rtol=1e-2), "mismatch vs reference"

    print("KERNEL_OK")
</pallas_src>

<mosaic_0001>
module attributes {stable_mosaic.version = 11 : i64} {
  func.func @_model_kernel(%arg0: i32, %arg1: memref<128x64xbf16, #tpu.memory_space<vmem>>, %arg2: memref<8x128xf32, #tpu.memory_space<vmem>>, %arg3: memref<64x128xbf16, #tpu.memory_space<vmem>>, %arg4: memref<1x128xf32, #tpu.memory_space<vmem>>, %arg5: memref<128x128xbf16, #tpu.memory_space<vmem>>, %arg6: memref<1x128xf32, #tpu.memory_space<vmem>>, %arg7: memref<8x128xf32, #tpu.memory_space<vmem>>) attributes {dimension_semantics = [#tpu.dimension_semantics<parallel>], iteration_bounds = array<i64: 2>, scalar_prefetch = 0 : i64, scratch_operands = 0 : i64, tpu.core_type = #tpu.core_type<tc>, window_params = [{transform_indices = @transform_0, window_bounds = array<i64: 128, 64>}, {pipeline_mode = #tpu.pipeline_mode<synchronous>, transform_indices = @transform_1, window_bounds = array<i64: 8, 128>}, {pipeline_mode = #tpu.pipeline_mode<synchronous>, transform_indices = @transform_2, window_bounds = array<i64: 64, 128>}, {pipeline_mode = #tpu.pipeline_mode<synchronous>, transform_indices = @transform_3, window_bounds = array<i64: 1, 128>}, {pipeline_mode = #tpu.pipeline_mode<synchronous>, transform_indices = @transform_4, window_bounds = array<i64: 128, 128>}, {pipeline_mode = #tpu.pipeline_mode<synchronous>, transform_indices = @transform_5, window_bounds = array<i64: 1, 128>}, {transform_indices = @transform_6, window_bounds = array<i64: 8, 128>}]} {
    %c0 = arith.constant 0 : index
    %c0_0 = arith.constant 0 : index
    %0 = vector.load %arg1[%c0, %c0_0] : memref<128x64xbf16, #tpu.memory_space<vmem>>, vector<128x64xbf16>
    %c0_1 = arith.constant 0 : index
    %c0_2 = arith.constant 0 : index
    %1 = vector.load %arg3[%c0_1, %c0_2] : memref<64x128xbf16, #tpu.memory_space<vmem>>, vector<64x128xbf16>
    %cst = arith.constant dense<0.000000e+00> : vector<128x128xf32>
    %2 = tpu.matmul %0, %1, %cst {dimension_numbers = #tpu.dot_dimension_numbers<[1], [0], [0], [1], [0, 0, 1, 1], [], []>} : vector<128x64xbf16>, vector<64x128xbf16>, vector<128x128xf32> -> vector<128x128xf32>
    %c0_3 = arith.constant 0 : index
    %c0_4 = arith.constant 0 : index
    %3 = vector.load %arg4[%c0_3, %c0_4] : memref<1x128xf32, #tpu.memory_space<vmem>>, vector<1x128xf32>
    %4 = vector.broadcast %3 : vector<1x128xf32> to vector<128x128xf32>
    %5 = arith.addf %2, %4 : vector<128x128xf32>
    %cst_5 = arith.constant 0.000000e+00 : f32
    %6 = vector.broadcast %cst_5 : f32 to vector<128x128xf32>
    %7 = arith.maximumf %5, %6 : vector<128x128xf32>
    %c0_6 = arith.constant 0 : index
    %c0_7 = arith.constant 0 : index
    %8 = vector.load %arg2[%c0_6, %c0_7] : memref<8x128xf32, #tpu.memory_space<vmem>>, vector<8x128xf32>
    %cst_8 = arith.constant dense<0.000000e+00> : vector<8x128xf32>
    %9 = tpu.matmul %8, %7, %cst_8 {dimension_numbers = #tpu.dot_dimension_numbers<[1], [0], [0], [1], [0, 0, 1, 1], [], []>} : vector<8x128xf32>, vector<128x128xf32>, vector<8x128xf32> -> vector<8x128xf32>
    %10 = arith.truncf %9 : vector<8x128xf32> to vector<8x128xbf16>
    %c0_9 = arith.constant 0 : index
    %c0_10 = arith.constant 0 : index
    %11 = vector.load %arg5[%c0_9, %c0_10] : memref<128x128xbf16, #tpu.memory_space<vmem>>, vector<128x128xbf16>
    %cst_11 = arith.constant dense<0.000000e+00> : vector<8x128xf32>
    %12 = tpu.matmul %10, %11, %cst_11 {dimension_numbers = #tpu.dot_dimension_numbers<[1], [0], [0], [1], [0, 0, 1, 1], [], []>} : vector<8x128xbf16>, vector<128x128xbf16>, vector<8x128xf32> -> vector<8x128xf32>
    %c0_12 = arith.constant 0 : index
    %c0_13 = arith.constant 0 : index
    %13 = vector.load %arg6[%c0_12, %c0_13] : memref<1x128xf32, #tpu.memory_space<vmem>>, vector<1x128xf32>
    %14 = vector.broadcast %13 : vector<1x128xf32> to vector<8x128xf32>
    %15 = arith.addf %12, %14 : vector<8x128xf32>
    %c0_14 = arith.constant 0 : index
    %c0_15 = arith.constant 0 : index
    %16 = vector.load %arg7[%c0_14, %c0_15] : memref<8x128xf32, #tpu.memory_space<vmem>>, vector<8x128xf32>
    tpu.vector_store %arg7[%c0_14, %c0_15], %15 {strides = array<i32>} : memref<8x128xf32, #tpu.memory_space<vmem>>, vector<8x128xf32>,
    return
  }
  func.func @transform_0(%arg0: i32) -> (i32, i32) {
    %c0_i32 = arith.constant 0 : i32
    %c0_i32_0 = arith.constant 0 : i32
    return %arg0, %c0_i32 : i32, i32
  }
  func.func @transform_1(%arg0: i32) -> (i32, i32) {
    %c0_i32 = arith.constant 0 : i32
    %c0_i32_0 = arith.constant 0 : i32
    %c0_i32_1 = arith.constant 0 : i32
    return %c0_i32, %c0_i32_0 : i32, i32
  }
  func.func @transform_2(%arg0: i32) -> (i32, i32) {
    %c0_i32 = arith.constant 0 : i32
    %c0_i32_0 = arith.constant 0 : i32
    %c0_i32_1 = arith.constant 0 : i32
    return %c0_i32, %c0_i32_0 : i32, i32
  }
  func.func @transform_3(%arg0: i32) -> (i32, i32) {
    %c0_i32 = arith.constant 0 : i32
    %c0_i32_0 = arith.constant 0 : i32
    %c0_i32_1 = arith.constant 0 : i32
    return %c0_i32, %c0_i32_0 : i32, i32
  }
  func.func @transform_4(%arg0: i32) -> (i32, i32) {
    %c0_i32 = arith.constant 0 : i32
    %c0_i32_0 = arith.constant 0 : i32
    %c0_i32_1 = arith.constant 0 : i32
    return %c0_i32, %c0_i32_0 : i32, i32
  }
  func.func @transform_5(%arg0: i32) -> (i32, i32) {
    %c0_i32 = arith.constant 0 : i32
    %c0_i32_0 = arith.constant 0 : i32
    %c0_i32_1 = arith.constant 0 : i32
    return %c0_i32, %c0_i32_0 : i32, i32
  }
  func.func @transform_6(%arg0: i32) -> (i32, i32) {
    %c0_i32 = arith.constant 0 : i32
    %c0_i32_0 = arith.constant 0 : i32
    return %arg0, %c0_i32 : i32, i32
  }
}

</mosaic_0001>

<bundles_post_ra>
// kernel: tpu_custom_call.1
= control target key start
LH: loop header
LB: loop body
LE: loop exit
PB: predicated region body
PF: predicated region fallthrough
CT: control target
= control target key end

     0   :  { %11 = vsyncpa [#allocation3], 0  ;;  %s1245_s0 = inlined_call_operand.vmem [shape: bf16[256,64], index: 0, kind: input, shape index: {}]   ;;  %s1246_s1 = inlined_call_operand.vmem [shape: f32[8,128], index: 1, kind: input, shape index: {}]   ;;  %s1247_s2 = inlined_call_operand.vmem [shape: bf16[64,128], index: 2, kind: input, shape index: {}]   ;;  %s1248_s3 = inlined_call_operand.vmem [shape: f32[1,128], index: 3, kind: input, shape index: {}]   ;;  %s1249_s4 = inlined_call_operand.vmem [shape: bf16[128,128], index: 4, kind: input, shape index: {}]   ;;  %s1250_s5 = inlined_call_operand.vmem [shape: f32[1,128], index: 5, kind: input, shape index: {}]   ;;  %s1251_s6 = inlined_call_operand.hbm [shape: f32[16,128], index: 6, kind: output, shape index: {}]  }
   0x1   :  { %13 = vsyncpa [#allocation3 + $0x1], 0  ;;  %s1062_s21 = smov 0   ;;  %s1064_s22 = smov 0  }
   0x2   :  { %s1066_s23 = smov 0   ;;  %s1068_s24 = smov 0  }
   0x3 LB: > { %s1083_s25 = sadd.s32 4294967295, %s1022_s24   ;;  %s743_s26 = sadd.s32 4294967294, %s1022_s24   ;;  %s1022_s24 = sphi %s1068_s24, %s1257_s24   ;;  %s1018_s23 = sphi %s1066_s23, %s1256_s23   ;;  %s1014_s22 = sphi %s1064_s22, %s1255_s22   ;;  %s1010_s21 = sphi %s1062_s21, %s1254_s21  }
   0x4   : > { %s1087_s27 = sadd.s32 1, %s1022_s24   ;;  %s157_s28 = sadd.s32 1, %s1018_s23 }
   0x5   : > { %s154_s29 = ssub.s32 %s1022_s24, %s1087_s27  ;;  %p167_p0 = scmp.ne.s32.totalorder %s1018_s23, %s1014_s22 }
   0x6   : > { %p155_p1 = scmp.eq.s32.totalorder %s154_s29, 0  ;;  %p168_p2 = scmp.eq.s32.totalorder %s1083_s25, 1 }
   0x7   : > { %p173_p3 = scmp.ne.s32.totalorder %s1014_s22, %s1010_s21  ;;  %p174_p4 = scmp.eq.s32.totalorder %s743_s26, 1 }
   0x8   : > { %s1098_s30 = scalar_select %p155_p1, %s1018_s23, %s157_s28  }
   0x9   : > { %p1100_p5 = por %p168_p2, %p167_p0  ;;  %p1104_p6 = por %p174_p4, %p173_p3 }
   0xa   : > { %p746_p7 = scmp.ge.s32.totalorder %s1022_s24, 1  ;;  %p216_p8 = scmp.lt.s32.totalorder %s1022_s24, 3 }
   0xc   : > { %p217_p9 = pnand %p746_p7, %p216_p8 }
   0xd   : > { %s748_s11 = sshll.u32 (!%p217_p9), %s1083_s25, 4  ;;  %s243_s12 = sand.u32 (!%p217_p9), 1, %s1014_s22  }
   0xe   : > { %220 = sbr.rel (%p217_p9) target bundleno = 696 (0x2b8), region = 44  ;;  %p247_p10 = scmp.lt.s32.totalorder (!%p217_p9), %s748_s11, 31 }
   0xf   : > { %s747_s13 = sshll.u32 (!%p217_p9), %s243_s12, 3  ;;  %s671_s28 = scalar_lea.sflag (!%p217_p9), [#allocation3], %s243_s12 }
  0x10   : > { %s245_s17 = scalar_lea.vmem (!%p217_p9), [#allocation2], %s747_s13 }
  0x11   : > { %s684_s18 = sshll.u32 (!%p217_p9), %s245_s17, 4  ;;  %s1206_s18 = int_to_ptr.vmem [resolvable:$true] %s684_s18 }
  0x12   : > { %s962_s29 = scalar_lea.vmem (!%p217_p9), %s1206_s18, 128 }
  0x13   : > { %v942_v0 = vld [vmem:[%s1247_s2 + $0x18] sm:$0xff]   ;;  %v943_v1 = vld [vmem:[%s1247_s2 + $0x10] sm:$0xff]   ;;  %v944_v2 = vld [vmem:[%s1247_s2 + $0x8] sm:$0xff]   ;;  %s1259_s11 = smov (!%p247_p10, %s748_s11), 31  ;;  %vm348_vm0 = vcmask 523264   ;;  %v1024_v12 = vmov 0.0   ;;  %p963_p11 = scmp.ne.s32.totalorder %s1206_s18, %s962_s29 }
  0x14   : > { %822 = vmatprep.subr.bf16.mxu1 %v942_v0  ;;  %s749_s16 = sshll.u32 %s1259_s11, 2  ;;  %v945_v4 = vld [vmem:[%s1247_s2] sm:$0xff]   ;;  %881 = vmatprep.subr.bf16.mxu0 %v1024_v12  ;;  %vm1025_vm1 = vmmov 0   ;;  %v954_v13 = vld [vmem:[%s1249_s4 + $0x38] sm:$0xff]   ;;  %v955_v14 = vld [vmem:[%s1249_s4 + $0x30] sm:$0xff]  }
  0x15   : > { %823 = vmatpush3.bf16.msra.mxu1 %v942_v0  ;;  %s250_s19 = scalar_lea.vmem %s1245_s0, %s749_s16  ;;  %897 = vmatprep.mubr.msk.bf16.mxu0 %vm1025_vm1, %v1024_v12  ;;  %v956_v15 = vld [vmem:[%s1249_s4 + $0x28] sm:$0xff]   ;;  %v957_v16 = vld [vmem:[%s1249_s4 + $0x20] sm:$0xff]   ;;  %v958_v17 = vld [vmem:[%s1249_s4 + $0x18] sm:$0xff]   ;;  %s781_s16 = sshll.u32 %s1083_s25, 7 }
  0x16   : > { %824 = vmatprep.subr.bf16.mxu1 %v943_v1  ;;  %v946_v3 = vld [vmem:[%s250_s19] sm:$0xff]   ;;  %v947_v5 = vld [vmem:[%s250_s19 + $0x8] sm:$0xff]   ;;  %v948_v6 = vld [vmem:[%s250_s19 + $0x10] sm:$0xff]   ;;  %882 = vmatpush3.bf16.msra.mxu0 %v954_v13  ;;  %s1204_s26 = scalar_lea.hbm %s1251_s6, %s781_s16  ;;  %p964_p12 = pnand %p963_p11, %p1100_p5 }
  0x17   : > { %830 = vmatprep.mubr.msk.bf16.mxu1 %vm348_vm0, %v946_v3  ;;  %v949_v7 = vld [vmem:[%s250_s19 + $0x18] sm:$0xff]   ;;  %v950_v8 = vld [vmem:[%s250_s19 + $0x20] sm:$0xff]   ;;  %v951_v9 = vld [vmem:[%s250_s19 + $0x28] sm:$0xff]   ;;  %883 = vmatprep.subr.bf16.mxu0 %v1024_v12  ;;  %s1026_s25 = smov [#allocation2]  }
  0x18   : > { %v952_v10 = vld [vmem:[%s250_s19 + $0x30] sm:$0xff]   ;;  %v953_v11 = vld [vmem:[%s250_s19 + $0x38] sm:$0xff]   ;;  %v960_v19 = vld [vmem:[%s1249_s4 + $0x8] sm:$0xff]   ;;  %p965_p13 = pneg %p964_p12  ;;  %s966_s9 = sshll.u32 %s1026_s25, 4  ;;  %s967_s9 = int_to_ptr.vmem [resolvable:$false] %s966_s9 }
  0x19   : > { %825 = vmatpush3.bf16.msra.mxu1 %v943_v1  ;;  %v959_v18 = vld [vmem:[%s1249_s4 + $0x10] sm:$0xff]   ;;  %v750_v34 = vld [vmem:[%s1248_s3] ss:$0 sm:$0xff]  ;;  %s968_s10 = scalar_lea.vmem %s967_s9, 256  ;;  %p969_p0 = scmp.lt.s32.totalorder %s1206_s18, %s967_s9 }
  0x1a   : > { %826 = vmatprep.subr.bf16.mxu1 %v944_v2  ;;  %884 = vmatpush3.bf16.msra.mxu0 %v955_v14  ;;  %p970_p1 = scmp.lt.s32.totalorder %s968_s10, %s962_s29 }
  0x1b   : > { %885 = vmatprep.subr.bf16.mxu0 %v1024_v12 }
  0x1c   : > { %p971_p2 = por %p970_p1, %p969_p0 }
  0x1d   : > { %827 = vmatpush3.bf16.msra.mxu1 %v944_v2 }
  0x1e   : > { %828 = vmatprep.subr.bf16.mxu1 %v945_v4  ;;  %886 = vmatpush3.bf16.msra.mxu0 %v956_v15  ;;  %p972_p3 = pnand %p971_p2, %p965_p13 }
  0x1f   : > { %887 = vmatprep.subr.bf16.mxu0 %v1024_v12 }
  0x21   : > { %829 = vmatpush3.bf16.msra.mxu1 %v945_v4 }
  0x22   : > { %846 = vmatprep.subr.mxu1 %v1024_v12  ;;  %888 = vmatpush3.bf16.msra.mxu0 %v957_v16 }
  0x23   : > { %889 = vmatprep.subr.bf16.mxu0 %v1024_v12 }
  0x24   : > { %831 = vmatmul.mubr.msk.bf16.vlgmr.msra.gmra.mxu1 %vm348_vm0, %v947_v5  ;;  %v486_v5 = vld [vmem:[%s1246_s1] sm:$0xff] }
  0x25   : > { %834 = vmatprep.mubr.msk.bf16.mxu1 %vm348_vm0, %v948_v6  ;;  %v961_v6 = vld [vmem:[%s1249_s4] sm:$0xff]  }
  0x26   : > { %890 = vmatpush3.bf16.msra.mxu0 %v958_v17 }
  0x27   : > { %891 = vmatprep.subr.bf16.mxu0 %v1024_v12 }
  0x2a   : > { %892 = vmatpush3.bf16.msra.mxu0 %v959_v18 }
  0x2b   : > { %893 = vmatprep.subr.bf16.mxu0 %v1024_v12 }
  0x2c   : > { %835 = vmatmul.mubr.msk.bf16.gmra.mxu1 %vm348_vm0, %v949_v7 }
  0x2d   : > { %838 = vmatprep.mubr.msk.bf16.mxu1 %vm348_vm0, %v950_v8 }
  0x2e   : > { %894 = vmatpush3.bf16.msra.mxu0 %v960_v19 }
  0x2f   : > { %895 = vmatprep.subr.bf16.mxu0 %v1024_v12 }
  0x32   : > { %896 = vmatpush3.bf16.msra.mxu0 %v961_v6 }
  0x34   : > { %839 = vmatmul.mubr.msk.bf16.gmra.mxu1 %vm348_vm0, %v951_v9 }
  0x35   : > { %842 = vmatprep.mubr.msk.bf16.mxu1 %vm348_vm0, %v952_v10  ;;  %v771_v10 = vld [vmem:[%s1250_s5] ss:$0 sm:$0xff] }
  0x3c   : > { %843 = vmatmul.mubr.msk.bf16.gmra.mxu1 %vm348_vm0, %v953_v11 }
  0x3d   : > { %878 = vmatprep.mubr.msk.f32.mxu1 %vm1025_vm1, %v1024_v12 }
  0xe4   : > { %v832_v20 = vpop.f32.mrf.mxu1 }
  0xe5   : > { %v416_v61 = vadd.f32 %v832_v20, %v750_v34 }
  0xe6   : > { %v1166_v21 = vpop.f32.mrf.mxu1 }
  0xe7   : > { %v472_v1 = vmax.f32 %v416_v61, 0.0  ;;  %v408_v2 = vadd.f32 %v750_v34, %v1166_v21 }
  0xe8   : > { %v833_v22 = vpop.f32.mrf.mxu1 }
  0xe9   : > { %v419_v59 = vadd.f32 %v833_v22, %v750_v34  ;;  %v470_v4 = vmax.f32 %v408_v2, 0.0 }
  0xea   : > { %v1168_v23 = vpop.f32.mrf.mxu1 }
  0xeb   : > { %v473_v63 = vmax.f32 %v419_v59, 0.0  ;;  %v411_v0 = vadd.f32 %v750_v34, %v1168_v23 }
  0xec   : > { %v836_v24 = vpop.f32.mrf.mxu1 }
  0xed   : > { %v432_v53 = vadd.f32 %v836_v24, %v750_v34  ;;  %v471_v3 = vmax.f32 %v411_v0, 0.0 }
  0xee   : > { %v423_v25 = vpop.f32.mrf.mxu1 }
  0xef   : > { %v476_v57 = vmax.f32 %v432_v53, 0.0  ;;  %v424_v58 = vadd.f32 %v750_v34, %v423_v25 }
  0xf0   : > { %v837_v26 = vpop.f32.mrf.mxu1 }
  0xf1   : > { %v435_v51 = vadd.f32 %v837_v26, %v750_v34  ;;  %v474_v62 = vmax.f32 %v424_v58, 0.0 }
  0xf2   : > { %v426_v27 = vpop.f32.mrf.mxu1 }
  0xf3   : > { %v477_v55 = vmax.f32 %v435_v51, 0.0  ;;  %v427_v56 = vadd.f32 %v750_v34, %v426_v27 }
  0xf4   : > { %v840_v28 = vpop.f32.mrf.mxu1 }
  0xf5   : > { %v448_v45 = vadd.f32 %v840_v28, %v750_v34  ;;  %v475_v60 = vmax.f32 %v427_v56, 0.0 }
  0xf6   : > { %v439_v29 = vpop.f32.mrf.mxu1 }
  0xf7   : > { %v480_v49 = vmax.f32 %v448_v45, 0.0  ;;  %v440_v50 = vadd.f32 %v750_v34, %v439_v29 }
  0xf8   : > { %v841_v30 = vpop.f32.mrf.mxu1 }
  0xf9   : > { %v451_v43 = vadd.f32 %v841_v30, %v750_v34  ;;  %v478_v54 = vmax.f32 %v440_v50, 0.0 }
  0xfa   : > { %v442_v31 = vpop.f32.mrf.mxu1 }
  0xfb   : > { %v481_v47 = vmax.f32 %v451_v43, 0.0  ;;  %v443_v48 = vadd.f32 %v750_v34, %v442_v31 }
  0xfc   : > { %v844_v32 = vpop.f32.mrf.mxu1 }
  0xfd   : > { %v464_v36 = vadd.f32 %v844_v32, %v750_v34  ;;  %v479_v52 = vmax.f32 %v443_v48, 0.0 }
  0xfe   : > { %v455_v33 = vpop.f32.mrf.mxu1 }
  0xff   : > { %v484_v41 = vmax.f32 %v464_v36, 0.0  ;;  %v456_v42 = vadd.f32 %v750_v34, %v455_v33 }
 0x100   : > { %v845_v35 = vpop.f32.mrf.mxu1 }
 0x101   : > { %v467_v37 = vadd.f32 %v845_v35, %v750_v34  ;;  %v482_v46 = vmax.f32 %v456_v42, 0.0 }
 0x102   : > { %v458_v38 = vpop.f32.mrf.mxu1 }
 0x103   : > { %v485_v39 = vmax.f32 %v467_v37, 0.0  ;;  %v459_v40 = vadd.f32 %v750_v34, %v458_v38 }
 0x105   : > { %847 = vmatpush3.msra.mxu1 %v485_v39  ;;  %v483_v44 = vmax.f32 %v459_v40, 0.0 }
 0x106   : > { %848 = vmatprep.subr.mxu1 %v1024_v12 }
 0x107   : > { %849 = vmatpush3.msra.mxu1 %v484_v41 }
 0x108   : > { %850 = vmatprep.subr.mxu1 %v1024_v12 }
 0x109   : > { %851 = vmatpush3.msra.mxu1 %v483_v44 }
 0x10a   : > { %852 = vmatprep.subr.mxu1 %v1024_v12 }
 0x10b   : > { %853 = vmatpush3.msra.mxu1 %v482_v46 }
 0x10c   : > { %854 = vmatprep.subr.mxu1 %v1024_v12 }
 0x10d   : > { %855 = vmatpush3.msra.mxu1 %v481_v47 }
 0x10e   : > { %856 = vmatprep.subr.mxu1 %v1024_v12 }
 0x10f   : > { %857 = vmatpush3.msra.mxu1 %v480_v49 }
 0x110   : > { %858 = vmatprep.subr.mxu1 %v1024_v12 }
 0x111   : > { %859 = vmatpush3.msra.mxu1 %v479_v52 }
 0x112   : > { %860 = vmatprep.subr.mxu1 %v1024_v12 }
 0x113   : > { %861 = vmatpush3.msra.mxu1 %v478_v54 }
 0x114   : > { %862 = vmatprep.subr.mxu1 %v1024_v12 }
 0x115   : > { %863 = vmatpush3.msra.mxu1 %v477_v55 }
 0x116   : > { %864 = vmatprep.subr.mxu1 %v1024_v12 }
 0x117   : > { %865 = vmatpush3.msra.mxu1 %v476_v57 }
 0x118   : > { %866 = vmatprep.subr.mxu1 %v1024_v12 }
 0x119   : > { %867 = vmatpush3.msra.mxu1 %v475_v60 }
 0x11a   : > { %868 = vmatprep.subr.mxu1 %v1024_v12 }
 0x11b   : > { %869 = vmatpush3.msra.mxu1 %v474_v62 }
 0x11c   : > { %870 = vmatprep.subr.mxu1 %v1024_v12 }
 0x11d   : > { %871 = vmatpush3.msra.mxu1 %v473_v63 }
 0x11e   : > { %872 = vmatprep.subr.mxu1 %v1024_v12 }
 0x11f   : > { %873 = vmatpush3.msra.mxu1 %v472_v1 }
 0x120   : > { %874 = vmatprep.subr.mxu1 %v1024_v12 }
 0x121   : > { %875 = vmatpush3.msra.mxu1 %v471_v3 }
 0x122   : > { %876 = vmatprep.subr.mxu1 %v1024_v12 }
 0x123   : > { %877 = vmatpush3.msra.mxu1 %v470_v4 }
 0x124   : > { %879 = vmatmul.mubr.f32.vlgmr.msra.gmra.mxu1 %v486_v5 }
 0x1e4   : > { %v553_v7 = vpop.f32.mrf.mxu1 }
 0x1e5   : > { %v557_v8 = vpack.c.bf16 %v553_v7, %v553_v7 }
 0x1e6   : > { %v880_v9 = vpop.f32.mrf.mxu1 }
 0x1e7   : > { %898 = vmatmul.mubr.bf16.vlgmr.msra.gmra.mxu0 %v557_v8 }
 0x2a7   : > { %v663_v11 = vpop.f32.mrf.mxu0 }
 0x2a8   : > { %v664_v12 = vadd.f32 %v771_v10, %v663_v11 }
 0x2a9   : > { %v899_v13 = vpop.f32.mrf.mxu0 }
 0x2aa   : > { %669 = vst [vmem:[%s245_s17] sm:$0xff] %v664_v12 }
 0x2ab   : > { %v666_v14 = vpop.f32.mrf.mxu0 }
 0x2ac   : > { %975 = shalt.err (!%p972_p3)
}
 0x2ad   : > { %s976_s11 = scalar_lea.hbm %s1204_s26, 128  ;;  %s980_s14 = scalar_lea.hbm %s1251_s6, 256 }
 0x2ae   : > { %p977_p4 = scmp.ne.s32.totalorder %s1204_s26, %s976_s11  ;;  %p981_p9 = scmp.lt.s32.totalorder %s1204_s26, %s1251_s6 }
 0x2af   : > { %p982_p10 = scmp.lt.s32.totalorder %s980_s14, %s976_s11 }
 0x2b0   : > { %p978_p7 = pnand %p977_p4, %p1100_p5 }
 0x2b1   : > { %p983_p11 = por %p982_p10, %p981_p9 }
 0x2b2   : > { %p979_p8 = pneg %p978_p7 }
 0x2b4   : > { %p984_p12 = pnand %p983_p11, %p979_p8 }
 0x2b6   : > { %987 = shalt.err (!%p984_p12)
}
 0x2b7   : > { %901 = dma.vmem_to_hbm [thread:$0]  (%p1100_p5), %s1206_s18, 128, %s1204_s26, %s671_s28   ;;  %v900_v15 = vpop.f32.mrf.mxu0 }
 0x2b8 PF: > { %p907_p13 = scmp.ge.s32.totalorder %s1022_s24, 2  ;;  %s696_s17 = sand.u32 1, %s1010_s21  }
 0x2b9   : > { %s697_s19 = scalar_lea.sflag [#allocation3], %s696_s17 }
 0x2ba   : > { %p904_p0 = pnand %p907_p13, %p1104_p6 }
 0x2bc   : > { %p905_p1 = pneg %p904_p0 }
 0x2be   : > { %1005 = dma.done.wait (%p905_p1), %s697_s19, 128  }
 0x2bf   : > { %1007 = vsyncadd (%p905_p1), %s697_s19, 4294967168  ;;  %p16_p2 = scmp.ge.s32.totalorder %s1087_s27, 4   ;;  %s1254_s21 = smov %s1014_s22 }
 0x2c0   : > { %s1255_s22 = smov %s1018_s23  ;;  %s1256_s23 = smov %s1098_s30 }
 0x2c1   : > { %s1257_s24 = smov %s1087_s27  ;;  %18 = sbr.rel (!%p16_p2) target bundleno = 3 (0x3), region = 79 }
 0x2c6   :  { %702 = vsyncpa [#allocation3], 1 }
 0x2c7   :  { %704 = vsyncpa [#allocation3 + $0x1], 1 }

</bundles_post_ra>
